<compile_context>
chip_gen: v6e
topology: v6e:2x2x1
jax: 0.10.0
libtpu: 0.0.40
codegen_flags: <defaults>
</compile_context>

<pallas_src>
import functools
import math

import jax
import jax.numpy as jnp
from jax.experimental import pallas as pl
from jax.experimental.pallas import tpu as pltpu

_LN_EPS = 1e-5  # torch.nn.LayerNorm default eps


def _erf(x, approx_recip):
    # Abramowitz & Stegun 7.1.26 rational approximation, |err| < 1.5e-7.
    # exp() runs on the EUP; the reciprocal also goes to the EUP when approx_recip.
    a1, a2, a3, a4, a5 = 0.254829592, -0.284496736, 1.421413741, -1.453152027, 1.061405429
    p = 0.3275911
    s = jnp.where(x >= 0.0, 1.0, -1.0)
    ax = jnp.abs(x)
    denom = 1.0 + p * ax
    t = pl.reciprocal(denom, approx=True) if approx_recip else 1.0 / denom
    poly = ((((a5 * t + a4) * t + a3) * t + a2) * t + a1) * t
    return s * (1.0 - poly * jnp.exp(-ax * ax))


def _gelu_exact(x, approx_recip):
    # nn.GELU() default (approximate='none'): 0.5 * x * (1 + erf(x / sqrt(2)))
    return 0.5 * x * (1.0 + _erf(x * (1.0 / math.sqrt(2.0)), approx_recip))


def _timesnet_kernel(x_ref, wf_t_ref, w1_t_ref, b1_ref, w2_t_ref, vecs_ref, o_ref,
                     *, inv_d, approx_recip):
    mm = wf_t_ref.dtype                           # matmul operand dtype (bf16 or f32)
    x_mm = x_ref[...]                             # (R, Dp) row tile, already in mm dtype
    x32 = x_mm.astype(jnp.float32)

    g1 = vecs_ref[0:1, :]                         # packed per-feature vectors (f32)
    be1 = vecs_ref[1:2, :]
    g2 = vecs_ref[2:3, :]
    be2 = vecs_ref[3:4, :]
    b2 = vecs_ref[4:5, :]
    mask = vecs_ref[5:6, :]                       # 1.0 on real features, 0.0 on lane pad

    def layer_norm(h, gamma, beta):
        # Masked LayerNorm over the real D features (padded lanes of h are zero).
        mu = jnp.sum(h, axis=-1, keepdims=True) * inv_d
        diff = (h - mu) * mask
        var = jnp.sum(diff * diff, axis=-1, keepdims=True) * inv_d
        return diff * jax.lax.rsqrt(var + _LN_EPS) * gamma + beta

    # FrequencyLayer == x @ W.T (exact algebraic fold; see header note).
    freq = jnp.dot(x_mm, wf_t_ref[...], preferred_element_type=jnp.float32)

    # norm1(freq + residual); dropout1 = identity (eval)
    h1 = layer_norm(freq + x32, g1, be1)

    # FFN: Linear(D, 4D) -> exact GELU -> (dropout: identity) -> Linear(4D, D)
    u = jnp.dot(h1.astype(mm), w1_t_ref[...], preferred_element_type=jnp.float32) + b1_ref[...]
    u = _gelu_exact(u, approx_recip)
    # TODO(synk): for very large D (>=1024) chunk the hidden dim here to cap live VMEM.
    v = jnp.dot(u.astype(mm), w2_t_ref[...], preferred_element_type=jnp.float32) + b2

    # norm2(ffn + residual); dropout2 = identity (eval)
    o_ref[...] = layer_norm(v + h1, g2, be2)


def _round_up(n, m):
    return ((n + m - 1) // m) * m


def _row_tile_target(d_model):
    """Generation-aware row-tile target (v5e MXU is 4x128^2; v6e/v7x are 2x256^2)."""
    try:
        kind = jax.devices()[0].device_kind.lower()
    except Exception:
        kind = ""
    is_v5e = ("v5 lite" in kind) or ("v5e" in kind) or ("v5litepod" in kind)
    is_v7 = ("7x" in kind) or ("v7" in kind)
    base = 128 if is_v5e else 256
    if d_model <= 256 and not is_v7:
        base = 512          # memory-bound small-D regime: amortize per-step overhead
    return base


def _pick_row_tile(n_rows, target):
    """Multiple-of-8 row tile; prefer an exact divisor that yields a grid of >= 2 steps."""
    target = max(8, (target // 8) * 8)
    if n_rows <= 8:
        return 8
    top = min(target, _round_up(n_rows, 8))
    for cand in range(top, 7, -8):
        if n_rows % cand == 0 and n_rows // cand >= 2:
            return cand
    # No clean divisor: split roughly in half (tail rows are zero-padded by the wrapper).
    half = _round_up((n_rows + 1) // 2, 8)
    return min(target, max(8, half))


def prepare_timesnet_params(params, compute_dtype=jnp.bfloat16):
    """One-time weight prep (hoisted out of the per-call path): transpose, cast,
    zero-pad feature dims to multiples of 128, pack per-feature vectors into one slab."""
    D = params["wf"].shape[0]
    H = params["w1"].shape[0]
    Dp = _round_up(max(D, 128), 128)
    Hp = _round_up(max(H, 128), 128)
    mm = compute_dtype

    def pad2(a, r, c):
        return jnp.pad(a, ((0, r - a.shape[0]), (0, c - a.shape[1])))

    wf_t = pad2(params["wf"].T, Dp, Dp).astype(mm)            # (Dp, Dp)
    w1_t = pad2(params["w1"].T, Dp, Hp).astype(mm)            # (Dp, Hp)
    w2_t = pad2(params["w2"].T, Hp, Dp).astype(mm)            # (Hp, Dp)
    b1 = jnp.pad(params["b1"].astype(jnp.float32), (0, Hp - H)).reshape(1, Hp)

    def padv(v):
        return jnp.pad(v.astype(jnp.float32), (0, Dp - D))

    vecs = jnp.zeros((8, Dp), jnp.float32)
    vecs = vecs.at[0, :].set(padv(params["g1"]))
    vecs = vecs.at[1, :].set(padv(params["be1"]))
    vecs = vecs.at[2, :].set(padv(params["g2"]))
    vecs = vecs.at[3, :].set(padv(params["be2"]))
    vecs = vecs.at[4, :].set(padv(params["b2"]))
    vecs = vecs.at[5, :].set(padv(jnp.ones((D,), jnp.float32)))   # feature mask
    return dict(wf_t=wf_t, w1_t=w1_t, b1=b1, w2_t=w2_t, vecs=vecs)


@functools.partial(jax.jit, static_argnames=("row_tile",))
def timesnet_block(x, prepared, row_tile=None):
    B, S, D = x.shape
    N = B * S
    Dp = prepared["wf_t"].shape[0]
    Hp = prepared["w1_t"].shape[1]
    mm = prepared["wf_t"].dtype
    mm_bytes = jnp.dtype(mm).itemsize

    target = row_tile if row_tile is not None else _row_tile_target(D)
    tile = _pick_row_tile(N, target)
    n_blocks = pl.cdiv(N, tile)
    Np = n_blocks * tile

    # Fold batch+time into the row axis; DMA activations in the matmul dtype.
    x2 = x.reshape(N, D).astype(mm)
    if (Np != N) or (Dp != D):
        x2 = jnp.pad(x2, ((0, Np - N), (0, Dp - D)))

    def const(shape):
        # Constant-index, single-buffered resident block (fetched once, stays in VMEM).
        return pl.BlockSpec(shape, lambda i: tuple(0 for _ in shape),
                            pipeline_mode=pl.Buffered(1))

    kernel = functools.partial(
        _timesnet_kernel,
        inv_d=1.0 / D,
        approx_recip=(jnp.dtype(mm) == jnp.dtype(jnp.bfloat16)),
    )

    grid_spec = pltpu.PrefetchScalarGridSpec(
        num_scalar_prefetch=0,
        grid=(n_blocks,),
        in_specs=[
            pl.BlockSpec((tile, Dp), lambda i: (i, 0)),   # activation row tile (2 bufs)
            const((Dp, Dp)),                              # W_freq^T   (resident, 1 buf)
            const((Dp, Hp)),                              # W1^T       (resident, 1 buf)
            const((1, Hp)),                               # b1
            const((Hp, Dp)),                              # W2^T       (resident, 1 buf)
            const((8, Dp)),                               # packed g1, be1, g2, be2, b2, mask
        ],
        out_specs=pl.BlockSpec((tile, Dp), lambda i: (i, 0)),
    )

    # Explicit scoped-VMEM budget: single-buffered weights + double-buffered tiles
    # + the (tile, Hp) f32 FFN intermediate + headroom.
    weight_bytes = (Dp * Dp + 2 * Dp * Hp) * mm_bytes + (Hp + 8 * Dp) * 4
    act_bytes = 2 * tile * Dp * mm_bytes + 2 * tile * Dp * 4
    live_bytes = 2 * tile * Hp * 4 + 6 * tile * Dp * 4
    est = weight_bytes + act_bytes + live_bytes
    vmem_limit = int(min(max(est * 3 // 2 + (4 << 20), 32 << 20), 120 << 20))

    out = pl.pallas_call(
        kernel,
        out_shape=jax.ShapeDtypeStruct((Np, Dp), jnp.float32),
        grid_spec=grid_spec,
        compiler_params=pltpu.CompilerParams(
            dimension_semantics=("parallel",),   # row-tile axis shards across v7x's 2 TCs
            vmem_limit_bytes=vmem_limit,
        ),
    )(x2, prepared["wf_t"], prepared["w1_t"], prepared["b1"],
      prepared["w2_t"], prepared["vecs"])

    return out[:N, :D].reshape(B, S, D)


def timesnet_block_ref(x, params):
    """Pure-JAX reference mirroring the PyTorch forward (eval mode), using real FFTs."""
    B, S, D = x.shape
    fft = jnp.fft.rfft(x, axis=1)
    wr = fft.real @ params["wf"].T
    wi = fft.imag @ params["wf"].T
    rec = jnp.fft.irfft(wr + 1j * wi, n=S, axis=1)

    def ln(h, g, b):
        mu = h.mean(-1, keepdims=True)
        var = ((h - mu) ** 2).mean(-1, keepdims=True)
        return (h - mu) / jnp.sqrt(var + _LN_EPS) * g + b

    h1 = ln(rec + x, params["g1"], params["be1"])
    u = h1 @ params["w1"].T + params["b1"]
    u = 0.5 * u * (1.0 + jax.scipy.special.erf(u / jnp.sqrt(2.0)))
    v = u @ params["w2"].T + params["b2"]
    return ln(v + h1, params["g2"], params["be2"])


if __name__ == "__main__":
    B, S, D = 2, 8, 32
    H = 4 * D

    key = jax.random.PRNGKey(0)
    kx, kwf, kw1, kb1, kw2, kb2 = jax.random.split(key, 6)

    x = jax.random.normal(kx, (B, S, D), jnp.float32)
    params = dict(
        wf=jax.random.normal(kwf, (D, D), jnp.float32),          # FrequencyLayer.weight ~ randn
        g1=jnp.ones((D,), jnp.float32), be1=jnp.zeros((D,), jnp.float32),
        w1=jax.random.uniform(kw1, (H, D), jnp.float32, -1.0, 1.0) / jnp.sqrt(D),
        b1=jax.random.uniform(kb1, (H,), jnp.float32, -1.0, 1.0) / jnp.sqrt(D),
        w2=jax.random.uniform(kw2, (D, H), jnp.float32, -1.0, 1.0) / jnp.sqrt(H),
        b2=jax.random.uniform(kb2, (D,), jnp.float32, -1.0, 1.0) / jnp.sqrt(H),
        g2=jnp.ones((D,), jnp.float32), be2=jnp.zeros((D,), jnp.float32),
    )

    ref = timesnet_block_ref(x, params)

    # f32 matmul path: tight check against the FFT-based reference.
    prep_f32 = prepare_timesnet_params(params, compute_dtype=jnp.float32)
    out_f32 = timesnet_block(x, prep_f32)
    jax.block_until_ready(out_f32)
    assert out_f32.shape == (B, S, D)
    err_f32 = float(jnp.max(jnp.abs(out_f32 - ref)))
    if err_f32 > 2e-3:
        raise AssertionError(f"f32 Pallas kernel mismatch vs reference, max abs err = {err_f32}")

    # bf16 MXU-operand path (default): looser tolerance consistent with bf16 rounding.
    prep_bf16 = prepare_timesnet_params(params, compute_dtype=jnp.bfloat16)
    out_bf16 = timesnet_block(x, prep_bf16)
    jax.block_until_ready(out_bf16)
    assert out_bf16.shape == (B, S, D)
    err_bf16 = float(jnp.max(jnp.abs(out_bf16 - ref)))
    if err_bf16 > 1e-1:
        raise AssertionError(f"bf16 Pallas kernel mismatch vs reference, max abs err = {err_bf16}")

    print("KERNEL_OK")
</pallas_src>

<mosaic_0001>
module attributes {stable_mosaic.version = 11 : i64} {
  func.func @_timesnet_kernel(%arg0: i32, %arg1: memref<8x128xf32, #tpu.memory_space<vmem>>, %arg2: memref<128x128xf32, #tpu.memory_space<vmem>>, %arg3: memref<128x128xf32, #tpu.memory_space<vmem>>, %arg4: memref<1x128xf32, #tpu.memory_space<vmem>>, %arg5: memref<128x128xf32, #tpu.memory_space<vmem>>, %arg6: memref<8x128xf32, #tpu.memory_space<vmem>>, %arg7: memref<8x128xf32, #tpu.memory_space<vmem>>) attributes {dimension_semantics = [#tpu.dimension_semantics<parallel>], iteration_bounds = array<i64: 2>, scalar_prefetch = 0 : i64, scratch_operands = 0 : i64, tpu.core_type = #tpu.core_type<tc>, window_params = [{transform_indices = @transform_0, window_bounds = array<i64: 8, 128>}, {pipeline_mode = #tpu.pipeline_mode<synchronous>, transform_indices = @transform_1, window_bounds = array<i64: 128, 128>}, {pipeline_mode = #tpu.pipeline_mode<synchronous>, transform_indices = @transform_2, window_bounds = array<i64: 128, 128>}, {pipeline_mode = #tpu.pipeline_mode<synchronous>, transform_indices = @transform_3, window_bounds = array<i64: 1, 128>}, {pipeline_mode = #tpu.pipeline_mode<synchronous>, transform_indices = @transform_4, window_bounds = array<i64: 128, 128>}, {pipeline_mode = #tpu.pipeline_mode<synchronous>, transform_indices = @transform_5, window_bounds = array<i64: 8, 128>}, {transform_indices = @transform_6, window_bounds = array<i64: 8, 128>}]} {
    %c0 = arith.constant 0 : index
    %c0_0 = arith.constant 0 : index
    %0 = vector.load %arg1[%c0, %c0_0] : memref<8x128xf32, #tpu.memory_space<vmem>>, vector<8x128xf32>
    %c0_1 = arith.constant 0 : index
    %c0_2 = arith.constant 0 : index
    %1 = vector.load %arg6[%c0_1, %c0_2] : memref<8x128xf32, #tpu.memory_space<vmem>>, vector<1x128xf32>
    %c1 = arith.constant 1 : index
    %c0_3 = arith.constant 0 : index
    %2 = vector.load %arg6[%c1, %c0_3] : memref<8x128xf32, #tpu.memory_space<vmem>>, vector<1x128xf32>
    %c2 = arith.constant 2 : index
    %c0_4 = arith.constant 0 : index
    %3 = vector.load %arg6[%c2, %c0_4] : memref<8x128xf32, #tpu.memory_space<vmem>>, vector<1x128xf32>
    %c3 = arith.constant 3 : index
    %c0_5 = arith.constant 0 : index
    %4 = vector.load %arg6[%c3, %c0_5] : memref<8x128xf32, #tpu.memory_space<vmem>>, vector<1x128xf32>
    %c4 = arith.constant 4 : index
    %c0_6 = arith.constant 0 : index
    %5 = vector.load %arg6[%c4, %c0_6] : memref<8x128xf32, #tpu.memory_space<vmem>>, vector<1x128xf32>
    %c5 = arith.constant 5 : index
    %c0_7 = arith.constant 0 : index
    %6 = vector.load %arg6[%c5, %c0_7] : memref<8x128xf32, #tpu.memory_space<vmem>>, vector<1x128xf32>
    %c0_8 = arith.constant 0 : index
    %c0_9 = arith.constant 0 : index
    %7 = vector.load %arg2[%c0_8, %c0_9] : memref<128x128xf32, #tpu.memory_space<vmem>>, vector<128x128xf32>
    %cst = arith.constant dense<0.000000e+00> : vector<8x128xf32>
    %8 = tpu.matmul %0, %7, %cst {dimension_numbers = #tpu.dot_dimension_numbers<[1], [0], [0], [1], [0, 0, 1, 1], [], []>} : vector<8x128xf32>, vector<128x128xf32>, vector<8x128xf32> -> vector<8x128xf32>
    %9 = arith.addf %8, %0 : vector<8x128xf32>
    %cst_10 = arith.constant dense<0.000000e+00> : vector<8xf32>
    %10 = vector.multi_reduction <add>, %9, %cst_10 [1] : vector<8x128xf32> to vector<8xf32>
    %11 = vector.shape_cast %10 : vector<8xf32> to vector<8x1xf32>
    %cst_11 = arith.constant 3.125000e-02 : f32
    %12 = vector.broadcast %cst_11 : f32 to vector<8x1xf32>
    %13 = arith.mulf %11, %12 : vector<8x1xf32>
    %14 = vector.broadcast %13 : vector<8x1xf32> to vector<8x128xf32>
    %15 = arith.subf %9, %14 : vector<8x128xf32>
    %16 = vector.broadcast %6 : vector<1x128xf32> to vector<8x128xf32>
    %17 = arith.mulf %15, %16 : vector<8x128xf32>
    %18 = arith.mulf %17, %17 : vector<8x128xf32>
    %cst_12 = arith.constant dense<0.000000e+00> : vector<8xf32>
    %19 = vector.multi_reduction <add>, %18, %cst_12 [1] : vector<8x128xf32> to vector<8xf32>
    %20 = vector.shape_cast %19 : vector<8xf32> to vector<8x1xf32>
    %cst_13 = arith.constant 3.125000e-02 : f32
    %21 = vector.broadcast %cst_13 : f32 to vector<8x1xf32>
    %22 = arith.mulf %20, %21 : vector<8x1xf32>
    %cst_14 = arith.constant 9.99999974E-6 : f32
    %23 = vector.broadcast %cst_14 : f32 to vector<8x1xf32>
    %24 = arith.addf %22, %23 : vector<8x1xf32>
    %25 = math.rsqrt %24 : vector<8x1xf32>
    %26 = vector.broadcast %25 : vector<8x1xf32> to vector<8x128xf32>
    %27 = arith.mulf %17, %26 : vector<8x128xf32>
    %28 = vector.broadcast %1 : vector<1x128xf32> to vector<8x128xf32>
    %29 = arith.mulf %27, %28 : vector<8x128xf32>
    %30 = vector.broadcast %2 : vector<1x128xf32> to vector<8x128xf32>
    %31 = arith.addf %29, %30 : vector<8x128xf32>
    %c0_15 = arith.constant 0 : index
    %c0_16 = arith.constant 0 : index
    %32 = vector.load %arg3[%c0_15, %c0_16] : memref<128x128xf32, #tpu.memory_space<vmem>>, vector<128x128xf32>
    %cst_17 = arith.constant dense<0.000000e+00> : vector<8x128xf32>
    %33 = tpu.matmul %31, %32, %cst_17 {dimension_numbers = #tpu.dot_dimension_numbers<[1], [0], [0], [1], [0, 0, 1, 1], [], []>} : vector<8x128xf32>, vector<128x128xf32>, vector<8x128xf32> -> vector<8x128xf32>
    %c0_18 = arith.constant 0 : index
    %c0_19 = arith.constant 0 : index
    %34 = vector.load %arg4[%c0_18, %c0_19] : memref<1x128xf32, #tpu.memory_space<vmem>>, vector<1x128xf32>
    %35 = vector.broadcast %34 : vector<1x128xf32> to vector<8x128xf32>
    %36 = arith.addf %33, %35 : vector<8x128xf32>
    %cst_20 = arith.constant 5.000000e-01 : f32
    %37 = vector.broadcast %cst_20 : f32 to vector<8x128xf32>
    %38 = arith.mulf %37, %36 : vector<8x128xf32>
    %cst_21 = arith.constant 0.707106769 : f32
    %39 = vector.broadcast %cst_21 : f32 to vector<8x128xf32>
    %40 = arith.mulf %36, %39 : vector<8x128xf32>
    %cst_22 = arith.constant 0.000000e+00 : f32
    %41 = vector.broadcast %cst_22 : f32 to vector<8x128xf32>
    %42 = arith.cmpf oge, %40, %41 : vector<8x128xf32>
    %cst_23 = arith.constant 1.000000e+00 : f32
    %cst_24 = arith.constant -1.000000e+00 : f32
    %43 = vector.broadcast %cst_23 : f32 to vector<8x128xf32>
    %44 = vector.broadcast %cst_24 : f32 to vector<8x128xf32>
    %45 = arith.select %42, %43, %44 : vector<8x128xi1>, vector<8x128xf32>
    %46 = math.absf %40 : vector<8x128xf32>
    %cst_25 = arith.constant 0.327591091 : f32
    %47 = vector.broadcast %cst_25 : f32 to vector<8x128xf32>
    %48 = arith.mulf %47, %46 : vector<8x128xf32>
    %cst_26 = arith.constant 1.000000e+00 : f32
    %49 = vector.broadcast %cst_26 : f32 to vector<8x128xf32>
    %50 = arith.addf %49, %48 : vector<8x128xf32>
    %cst_27 = arith.constant 1.000000e+00 : f32
    %51 = vector.broadcast %cst_27 : f32 to vector<8x128xf32>
    %52 = arith.divf %51, %50 : vector<8x128xf32>
    %cst_28 = arith.constant 1.06140542 : f32
    %53 = vector.broadcast %cst_28 : f32 to vector<8x128xf32>
    %54 = arith.mulf %53, %52 : vector<8x128xf32>
    %cst_29 = arith.constant -1.45315206 : f32
    %55 = vector.broadcast %cst_29 : f32 to vector<8x128xf32>
    %56 = arith.addf %54, %55 : vector<8x128xf32>
    %57 = arith.mulf %56, %52 : vector<8x128xf32>
    %cst_30 = arith.constant 1.42141378 : f32
    %58 = vector.broadcast %cst_30 : f32 to vector<8x128xf32>
    %59 = arith.addf %57, %58 : vector<8x128xf32>
    %60 = arith.mulf %59, %52 : vector<8x128xf32>
    %cst_31 = arith.constant -0.284496725 : f32
    %61 = vector.broadcast %cst_31 : f32 to vector<8x128xf32>
    %62 = arith.addf %60, %61 : vector<8x128xf32>
    %63 = arith.mulf %62, %52 : vector<8x128xf32>
    %cst_32 = arith.constant 0.254829586 : f32
    %64 = vector.broadcast %cst_32 : f32 to vector<8x128xf32>
    %65 = arith.addf %63, %64 : vector<8x128xf32>
    %66 = arith.mulf %65, %52 : vector<8x128xf32>
    %cst_33 = arith.constant 0.000000e+00 : f32
    %67 = vector.broadcast %cst_33 : f32 to vector<8x128xf32>
    %68 = arith.subf %67, %46 : vector<8x128xf32>
    %69 = arith.mulf %68, %46 : vector<8x128xf32>
    %70 = math.exp %69 : vector<8x128xf32>
    %71 = arith.mulf %66, %70 : vector<8x128xf32>
    %cst_34 = arith.constant 1.000000e+00 : f32
    %72 = vector.broadcast %cst_34 : f32 to vector<8x128xf32>
    %73 = arith.subf %72, %71 : vector<8x128xf32>
    %74 = arith.mulf %45, %73 : vector<8x128xf32>
    %cst_35 = arith.constant 1.000000e+00 : f32
    %75 = vector.broadcast %cst_35 : f32 to vector<8x128xf32>
    %76 = arith.addf %75, %74 : vector<8x128xf32>
    %77 = arith.mulf %38, %76 : vector<8x128xf32>
    %c0_36 = arith.constant 0 : index
    %c0_37 = arith.constant 0 : index
    %78 = vector.load %arg5[%c0_36, %c0_37] : memref<128x128xf32, #tpu.memory_space<vmem>>, vector<128x128xf32>
    %cst_38 = arith.constant dense<0.000000e+00> : vector<8x128xf32>
    %79 = tpu.matmul %77, %78, %cst_38 {dimension_numbers = #tpu.dot_dimension_numbers<[1], [0], [0], [1], [0, 0, 1, 1], [], []>} : vector<8x128xf32>, vector<128x128xf32>, vector<8x128xf32> -> vector<8x128xf32>
    %80 = vector.broadcast %5 : vector<1x128xf32> to vector<8x128xf32>
    %81 = arith.addf %79, %80 : vector<8x128xf32>
    %82 = arith.addf %81, %31 : vector<8x128xf32>
    %cst_39 = arith.constant dense<0.000000e+00> : vector<8xf32>
    %83 = vector.multi_reduction <add>, %82, %cst_39 [1] : vector<8x128xf32> to vector<8xf32>
    %84 = vector.shape_cast %83 : vector<8xf32> to vector<8x1xf32>
    %cst_40 = arith.constant 3.125000e-02 : f32
    %85 = vector.broadcast %cst_40 : f32 to vector<8x1xf32>
    %86 = arith.mulf %84, %85 : vector<8x1xf32>
    %87 = vector.broadcast %86 : vector<8x1xf32> to vector<8x128xf32>
    %88 = arith.subf %82, %87 : vector<8x128xf32>
    %89 = vector.broadcast %6 : vector<1x128xf32> to vector<8x128xf32>
    %90 = arith.mulf %88, %89 : vector<8x128xf32>
    %91 = arith.mulf %90, %90 : vector<8x128xf32>
    %cst_41 = arith.constant dense<0.000000e+00> : vector<8xf32>
    %92 = vector.multi_reduction <add>, %91, %cst_41 [1] : vector<8x128xf32> to vector<8xf32>
    %93 = vector.shape_cast %92 : vector<8xf32> to vector<8x1xf32>
    %cst_42 = arith.constant 3.125000e-02 : f32
    %94 = vector.broadcast %cst_42 : f32 to vector<8x1xf32>
    %95 = arith.mulf %93, %94 : vector<8x1xf32>
    %cst_43 = arith.constant 9.99999974E-6 : f32
    %96 = vector.broadcast %cst_43 : f32 to vector<8x1xf32>
    %97 = arith.addf %95, %96 : vector<8x1xf32>
    %98 = math.rsqrt %97 : vector<8x1xf32>
    %99 = vector.broadcast %98 : vector<8x1xf32> to vector<8x128xf32>
    %100 = arith.mulf %90, %99 : vector<8x128xf32>
    %101 = vector.broadcast %3 : vector<1x128xf32> to vector<8x128xf32>
    %102 = arith.mulf %100, %101 : vector<8x128xf32>
    %103 = vector.broadcast %4 : vector<1x128xf32> to vector<8x128xf32>
    %104 = arith.addf %102, %103 : vector<8x128xf32>
    %c0_44 = arith.constant 0 : index
    %c0_45 = arith.constant 0 : index
    %105 = vector.load %arg7[%c0_44, %c0_45] : memref<8x128xf32, #tpu.memory_space<vmem>>, vector<8x128xf32>
    tpu.vector_store %arg7[%c0_44, %c0_45], %104 {strides = array<i32>} : memref<8x128xf32, #tpu.memory_space<vmem>>, vector<8x128xf32>,
    return
  }
  func.func @transform_0(%arg0: i32) -> (i32, i32) {
    %c0_i32 = arith.constant 0 : i32
    %c0_i32_0 = arith.constant 0 : i32
    return %arg0, %c0_i32 : i32, i32
  }
  func.func @transform_1(%arg0: i32) -> (i32, i32) {
    %c0_i32 = arith.constant 0 : i32
    %c0_i32_0 = arith.constant 0 : i32
    %c0_i32_1 = arith.constant 0 : i32
    return %c0_i32, %c0_i32_0 : i32, i32
  }
  func.func @transform_2(%arg0: i32) -> (i32, i32) {
    %c0_i32 = arith.constant 0 : i32
    %c0_i32_0 = arith.constant 0 : i32
    %c0_i32_1 = arith.constant 0 : i32
    return %c0_i32, %c0_i32_0 : i32, i32
  }
  func.func @transform_3(%arg0: i32) -> (i32, i32) {
    %c0_i32 = arith.constant 0 : i32
    %c0_i32_0 = arith.constant 0 : i32
    %c0_i32_1 = arith.constant 0 : i32
    return %c0_i32, %c0_i32_0 : i32, i32
  }
  func.func @transform_4(%arg0: i32) -> (i32, i32) {
    %c0_i32 = arith.constant 0 : i32
    %c0_i32_0 = arith.constant 0 : i32
    %c0_i32_1 = arith.constant 0 : i32
    return %c0_i32, %c0_i32_0 : i32, i32
  }
  func.func @transform_5(%arg0: i32) -> (i32, i32) {
    %c0_i32 = arith.constant 0 : i32
    %c0_i32_0 = arith.constant 0 : i32
    %c0_i32_1 = arith.constant 0 : i32
    return %c0_i32, %c0_i32_0 : i32, i32
  }
  func.func @transform_6(%arg0: i32) -> (i32, i32) {
    %c0_i32 = arith.constant 0 : i32
    %c0_i32_0 = arith.constant 0 : i32
    return %arg0, %c0_i32 : i32, i32
  }
}

</mosaic_0001>

<bundles_post_ra>
// kernel: timesnet_block.1
= control target key start
LH: loop header
LB: loop body
LE: loop exit
PB: predicated region body
PF: predicated region fallthrough
CT: control target
= control target key end

     0   :  { %11 = vsyncpa [#allocation3], 0  ;;  %s1262_s0 = inlined_call_operand.vmem [shape: f32[16,128], index: 0, kind: input, shape index: {}]   ;;  %s1263_s1 = inlined_call_operand.hbm [shape: f32[128,128], index: 1, kind: input, shape index: {}]   ;;  %s1264_s2 = inlined_call_operand.hbm [shape: f32[128,128], index: 2, kind: input, shape index: {}]   ;;  %s1265_s3 = inlined_call_operand.vmem [shape: f32[1,128], index: 3, kind: input, shape index: {}]   ;;  %s1266_s4 = inlined_call_operand.hbm [shape: f32[128,128], index: 4, kind: input, shape index: {}]   ;;  %s1267_s5 = inlined_call_operand.vmem [shape: f32[8,128], index: 5, kind: input, shape index: {}]   ;;  %s1268_s6 = inlined_call_operand.vmem [shape: f32[16,128], index: 6, kind: output, shape index: {}]  }
   0x1   :  { %12 = vsyncpa [#allocation5], 0  ;;  %s1095_s21 = smov 0  }
   0x2 LB: > { %s1101_s22 = sadd.s32 4294967295, %s1050_s21   ;;  %p730_p0 = scmp.ge.s32.totalorder %s1050_s21, 1  ;;  %s1050_s21 = sphi %s1095_s21, %s18_s21  }
   0x3   : > { %p180_p1 = scmp.lt.s32.totalorder %s1050_s21, 3  ;;  %p928_p2 = scmp.eq.s32.totalorder %s1101_s22, 0 }
   0x4   : > { %s1052_s24 = smov [#allocation4]   ;;  %s1053_s26 = smov [#allocation2]  }
   0x5   : > { %p1106_p3 = pnand %p730_p0, %p180_p1  ;;  %s205_s25 = sshll.u32 %s1052_s24, 4  ;;  %s206_s25 = int_to_ptr.vmem [resolvable:$true] %s205_s25 }
   0x6   : > { %s192_s27 = sshll.u32 %s1053_s26, 4  ;;  %s1054_s29 = smov [#allocation6]   ;;  %s193_s27 = int_to_ptr.vmem [resolvable:$true] %s192_s27 }
   0x7   : > { %p918_p4 = pneg %p1106_p3  ;;  %s221_s30 = sshll.u32 %s1054_s29, 4  ;;  %s1118_s30 = int_to_ptr.vmem [resolvable:$true] %s221_s30 }
   0x8   : > { %s969_s7 = scalar_lea.vmem %s206_s25, 2048  ;;  %p977_p10 = scmp.lt.s32.totalorder %s206_s25, %s206_s25 }
   0x9   : > { %p1114_p5 = pnand %p928_p2, %p918_p4  ;;  %p970_p7 = scmp.ne.s32.totalorder %s206_s25, %s969_s7 }
   0xa   : > { %p978_p11 = scmp.lt.s32.totalorder %s969_s7, %s969_s7 }
   0xb   : > { %p960_p6 = pneg %p1114_p5 }
   0xc   : > { %p979_p12 = por %p978_p11, %p977_p10 }
   0xd   : > { %p972_p8 = pnand %p970_p7, %p960_p6 }
   0xf   : > { %p973_p9 = pneg %p972_p8 }
  0x11   : > { %p980_p13 = pnand %p979_p12, %p973_p9 }
  0x13   : > { %983 = shalt.err (!%p980_p13)
}
  0x14   : > { %s1055_s8 = smov 128   ;;  %s1056_s9 = smov 8  }
  0x15   : > { %924 = dma.hbm_to_vmem [thread:$0]  (!%p1114_p5), %s1264_s2, 2048, %s206_s25, [#allocation5], %s1055_s8, %s1055_s8, %s1056_s9  }
  0x16   : > { %s995_s12 = scalar_lea.vmem %s193_s27, 2048  ;;  %p1003_p7 = scmp.lt.s32.totalorder %s193_s27, %s193_s27 }
  0x17   : > { %p996_p0 = scmp.ne.s32.totalorder %s193_s27, %s995_s12  ;;  %p1004_p8 = scmp.lt.s32.totalorder %s995_s12, %s995_s12 }
  0x19   : > { %p998_p1 = pnand %p996_p0, %p960_p6  ;;  %p1005_p10 = por %p1004_p8, %p1003_p7 }
  0x1b   : > { %p999_p4 = pneg %p998_p1 }
  0x1d   : > { %p1006_p9 = pnand %p1005_p10, %p999_p4 }
  0x1f   : > { %1009 = shalt.err (!%p1006_p9)
}
  0x20   : > { %921 = dma.hbm_to_vmem [thread:$0]  (!%p1114_p5), %s1263_s1, 2048, %s193_s27, [#allocation3], %s1055_s8, %s1055_s8, %s1056_s9  }
  0x21   : > { %s1021_s15 = scalar_lea.vmem %s1118_s30, 2048  ;;  %p1029_p0 = scmp.lt.s32.totalorder %s1118_s30, %s1118_s30 }
  0x22   : > { %p1022_p11 = scmp.ne.s32.totalorder %s1118_s30, %s1021_s15  ;;  %p1030_p1 = scmp.lt.s32.totalorder %s1021_s15, %s1021_s15 }
  0x24   : > { %p1024_p12 = pnand %p1022_p11, %p960_p6  ;;  %p1031_p4 = por %p1030_p1, %p1029_p0 }
  0x26   : > { %p1025_p13 = pneg %p1024_p12 }
  0x28   : > { %p1032_p7 = pnand %p1031_p4, %p1025_p13 }
  0x2a   : > { %1035 = shalt.err (!%p1032_p7)
}
  0x2b   : > { %927 = dma.hbm_to_vmem [thread:$0]  (!%p1114_p5), %s1266_s4, 2048, %s1118_s30, [#allocation5], %s1055_s8, %s1055_s8, %s1056_s9  }
  0x2c   : > { %247 = sbr.rel (%p1106_p3) target bundleno = 1340 (0x53c), region = 44 }
  0x31   : > { %1041 = dma.done.wait (%p928_p2), [#allocation3], 2048  }
  0x32   : > { %1043 = vsyncadd (%p928_p2), [#allocation3], 4294965248 }
  0x33   : > { %1045 = dma.done.wait (%p928_p2), [#allocation5], 4096  }
  0x34   : > { %1047 = vsyncadd (%p928_p2), [#allocation5], 4294963200  ;;  %v1057_v0 = vmov 0.0   ;;  %vm1058_vm0 = vmmov 0   ;;  %v313_v1 = vld [vmem:[#allocation2 + $0x78] sm:$0xff]  ;;  %v312_v2 = vld [vmem:[#allocation2 + $0x70] sm:$0xff] }
  0x35   : > { %801 = vmatprep.subr.mxu0 %v1057_v0  ;;  %833 = vmatprep.mubr.msk.f32.mxu0 %vm1058_vm0, %v1057_v0  ;;  %v311_v3 = vld [vmem:[#allocation2 + $0x68] sm:$0xff]  ;;  %v310_v4 = vld [vmem:[#allocation2 + $0x60] sm:$0xff]  ;;  %v309_v5 = vld [vmem:[#allocation2 + $0x58] sm:$0xff]  ;;  %p283_p2 = scmp.lt.s32.totalorder %s1101_s22, 1 }
  0x36   : > { %836 = vmatprep.subr.mxu1 %v1057_v0  ;;  %868 = vmatprep.mubr.msk.f32.mxu1 %vm1058_vm0, %v1057_v0  ;;  %v308_v6 = vld [vmem:[#allocation2 + $0x50] sm:$0xff]  ;;  %v307_v7 = vld [vmem:[#allocation2 + $0x48] sm:$0xff]  ;;  %v306_v8 = vld [vmem:[#allocation2 + $0x40] sm:$0xff] }
  0x37   : > { %802 = vmatpush3.msra.mxu0 %v313_v1  ;;  %v305_v9 = vld [vmem:[#allocation2 + $0x38] sm:$0xff]  ;;  %v304_v10 = vld [vmem:[#allocation2 + $0x30] sm:$0xff]  ;;  %v303_v11 = vld [vmem:[#allocation2 + $0x28] sm:$0xff]  ;;  %s1272_s22 = smov (!%p283_p2, %s1101_s22), 1 }
  0x38   : > { %803 = vmatprep.subr.mxu0 %v1057_v0  ;;  %v302_v12 = vld [vmem:[#allocation2 + $0x20] sm:$0xff]  ;;  %v301_v13 = vld [vmem:[#allocation2 + $0x18] sm:$0xff]  ;;  %s739_s18 = sshll.u32 %s1272_s22, 3  ;;  %v300_v14 = vld [vmem:[#allocation2 + $0x10] sm:$0xff] }
  0x39   : > { %804 = vmatpush3.msra.mxu0 %v312_v2  ;;  %v299_v15 = vld [vmem:[#allocation2 + $0x8] sm:$0xff]  ;;  %s286_s23 = scalar_lea.vmem %s1262_s0, %s739_s18  ;;  %v298_v16 = vld [vmem:[#allocation2] sm:$0xff]  ;;  %v425_v21 = vld [vmem:[#allocation4 + $0x78] sm:$0xff]  ;;  %s290_s16 = scalar_lea.vmem %s1268_s6, %s739_s18 }
  0x3a   : > { %805 = vmatprep.subr.mxu0 %v1057_v0  ;;  %v291_v17 = vld [vmem:[%s286_s23] sm:$0xff]  ;;  %v424_v22 = vld [vmem:[#allocation4 + $0x70] sm:$0xff]  ;;  %837 = vmatpush3.msra.mxu1 %v425_v21  ;;  %v423_v23 = vld [vmem:[#allocation4 + $0x68] sm:$0xff] }
  0x3b   : > { %806 = vmatpush3.msra.mxu0 %v311_v3  ;;  %838 = vmatprep.subr.mxu1 %v1057_v0  ;;  %v422_v24 = vld [vmem:[#allocation4 + $0x60] sm:$0xff]  ;;  %v421_v31 = vld [vmem:[#allocation4 + $0x58] sm:$0xff]  ;;  %v420_v32 = vld [vmem:[#allocation4 + $0x50] sm:$0xff] }
  0x3c   : > { %807 = vmatprep.subr.mxu0 %v1057_v0  ;;  %839 = vmatpush3.msra.mxu1 %v424_v22  ;;  %v1202_v27 = vld [vmem:[%s1267_s5 + $0x5] ss:$0 sm:$0xff]  ;;  %v419_v33 = vld [vmem:[#allocation4 + $0x48] sm:$0xff]  ;;  %v417_v35 = vld [vmem:[#allocation4 + $0x38] sm:$0xff] }
  0x3d   : > { %808 = vmatpush3.msra.mxu0 %v310_v4  ;;  %840 = vmatprep.subr.mxu1 %v1057_v0  ;;  %v418_v34 = vld [vmem:[#allocation4 + $0x40] sm:$0xff]  ;;  %v416_v36 = vld [vmem:[#allocation4 + $0x30] sm:$0xff]  ;;  %v415_v37 = vld [vmem:[#allocation4 + $0x28] sm:$0xff] }
  0x3e   : > { %809 = vmatprep.subr.mxu0 %v1057_v0  ;;  %841 = vmatpush3.msra.mxu1 %v423_v23  ;;  %v414_v38 = vld [vmem:[#allocation4 + $0x20] sm:$0xff]  ;;  %v413_v39 = vld [vmem:[#allocation4 + $0x18] sm:$0xff]  ;;  %v412_v40 = vld [vmem:[#allocation4 + $0x10] sm:$0xff] }
  0x3f   : > { %810 = vmatpush3.msra.mxu0 %v309_v5  ;;  %842 = vmatprep.subr.mxu1 %v1057_v0  ;;  %v411_v41 = vld [vmem:[#allocation4 + $0x8] sm:$0xff]  ;;  %v410_v42 = vld [vmem:[#allocation4] sm:$0xff]  ;;  %v545_v52 = vld [vmem:[#allocation6 + $0x78] sm:$0xff] }
  0x40   : > { %811 = vmatprep.subr.mxu0 %v1057_v0  ;;  %843 = vmatpush3.msra.mxu1 %v422_v24  ;;  %v742_v47 = vld [vmem:[%s1267_s5] ss:$0 sm:$0xff]  ;;  %v743_v49 = vld [vmem:[%s1267_s5 + $0x1] ss:$0 sm:$0xff]  ;;  %v544_v53 = vld [vmem:[#allocation6 + $0x70] sm:$0xff] }
  0x41   : > { %812 = vmatpush3.msra.mxu0 %v308_v6  ;;  %844 = vmatprep.subr.mxu1 %v1057_v0  ;;  %v543_v54 = vld [vmem:[#allocation6 + $0x68] sm:$0xff]  ;;  %v542_v55 = vld [vmem:[#allocation6 + $0x60] sm:$0xff]  ;;  %v541_v56 = vld [vmem:[#allocation6 + $0x58] sm:$0xff] }
  0x42   : > { %813 = vmatprep.subr.mxu0 %v1057_v0  ;;  %845 = vmatpush3.msra.mxu1 %v421_v31  ;;  %v540_v57 = vld [vmem:[#allocation6 + $0x50] sm:$0xff]  ;;  %v539_v58 = vld [vmem:[#allocation6 + $0x48] sm:$0xff]  ;;  %v538_v59 = vld [vmem:[#allocation6 + $0x40] sm:$0xff] }
  0x43   : > { %814 = vmatpush3.msra.mxu0 %v307_v7  ;;  %846 = vmatprep.subr.mxu1 %v1057_v0  ;;  %v537_v60 = vld [vmem:[#allocation6 + $0x38] sm:$0xff]  ;;  %v536_v61 = vld [vmem:[#allocation6 + $0x30] sm:$0xff]  ;;  %v535_v62 = vld [vmem:[#allocation6 + $0x28] sm:$0xff] }
  0x44   : > { %815 = vmatprep.subr.mxu0 %v1057_v0  ;;  %847 = vmatpush3.msra.mxu1 %v420_v32  ;;  %v534_v63 = vld [vmem:[#allocation6 + $0x20] sm:$0xff]  ;;  %v533_v1 = vld [vmem:[#allocation6 + $0x18] sm:$0xff]  ;;  %v532_v2 = vld [vmem:[#allocation6 + $0x10] sm:$0xff] }
  0x45   : > { %816 = vmatpush3.msra.mxu0 %v306_v8  ;;  %848 = vmatprep.subr.mxu1 %v1057_v0  ;;  %v531_v3 = vld [vmem:[#allocation6 + $0x8] sm:$0xff]  ;;  %v530_v4 = vld [vmem:[#allocation6] sm:$0xff] }
  0x46   : > { %817 = vmatprep.subr.mxu0 %v1057_v0  ;;  %849 = vmatpush3.msra.mxu1 %v419_v33  ;;  %v744_v5 = vld [vmem:[%s1265_s3] ss:$0 sm:$0xff] }
  0x47   : > { %818 = vmatpush3.msra.mxu0 %v305_v9  ;;  %850 = vmatprep.subr.mxu1 %v1057_v0 }
  0x48   : > { %819 = vmatprep.subr.mxu0 %v1057_v0  ;;  %851 = vmatpush3.msra.mxu1 %v418_v34 }
  0x49   : > { %820 = vmatpush3.msra.mxu0 %v304_v10  ;;  %852 = vmatprep.subr.mxu1 %v1057_v0 }
  0x4a   : > { %821 = vmatprep.subr.mxu0 %v1057_v0  ;;  %853 = vmatpush3.msra.mxu1 %v417_v35  ;;  %v745_v35 = vld [vmem:[%s1267_s5 + $0x4] ss:$0 sm:$0xff] }
  0x4b   : > { %822 = vmatpush3.msra.mxu0 %v303_v11  ;;  %854 = vmatprep.subr.mxu1 %v1057_v0 }
  0x4c   : > { %823 = vmatprep.subr.mxu0 %v1057_v0  ;;  %855 = vmatpush3.msra.mxu1 %v416_v36 }
  0x4d   : > { %824 = vmatpush3.msra.mxu0 %v302_v12  ;;  %856 = vmatprep.subr.mxu1 %v1057_v0 }
  0x4e   : > { %825 = vmatprep.subr.mxu0 %v1057_v0  ;;  %857 = vmatpush3.msra.mxu1 %v415_v37 }
  0x4f   : > { %826 = vmatpush3.msra.mxu0 %v301_v13  ;;  %858 = vmatprep.subr.mxu1 %v1057_v0 }
  0x50   : > { %827 = vmatprep.subr.mxu0 %v1057_v0  ;;  %859 = vmatpush3.msra.mxu1 %v414_v38 }
  0x51   : > { %828 = vmatpush3.msra.mxu0 %v300_v14  ;;  %860 = vmatprep.subr.mxu1 %v1057_v0 }
  0x52   : > { %829 = vmatprep.subr.mxu0 %v1057_v0  ;;  %861 = vmatpush3.msra.mxu1 %v413_v39 }
  0x53   : > { %830 = vmatpush3.msra.mxu0 %v299_v15  ;;  %862 = vmatprep.subr.mxu1 %v1057_v0 }
  0x54   : > { %831 = vmatprep.subr.mxu0 %v1057_v0  ;;  %863 = vmatpush3.msra.mxu1 %v412_v40 }
  0x55   : > { %832 = vmatpush3.msra.mxu0 %v298_v16  ;;  %864 = vmatprep.subr.mxu1 %v1057_v0 }
  0x56   : > { %834 = vmatmul.mubr.f32.vlgmr.msra.gmra.mxu0 %v291_v17  ;;  %871 = vmatprep.subr.mxu0 %v1057_v0 }
  0x57   : > { %903 = vmatprep.mubr.msk.f32.mxu0 %vm1058_vm0, %v1057_v0  ;;  %865 = vmatpush3.msra.mxu1 %v411_v41 }
  0x58   : > { %866 = vmatprep.subr.mxu1 %v1057_v0  ;;  %872 = vmatpush3.msra.mxu0 %v545_v52 }
  0x59   : > { %867 = vmatpush3.msra.mxu1 %v410_v42  ;;  %873 = vmatprep.subr.mxu0 %v1057_v0 }
  0x5a   : > { %874 = vmatpush3.msra.mxu0 %v544_v53 }
  0x5b   : > { %875 = vmatprep.subr.mxu0 %v1057_v0 }
  0x5c   : > { %876 = vmatpush3.msra.mxu0 %v543_v54 }
  0x5d   : > { %877 = vmatprep.subr.mxu0 %v1057_v0 }
  0x5e   : > { %878 = vmatpush3.msra.mxu0 %v542_v55 }
  0x5f   : > { %879 = vmatprep.subr.mxu0 %v1057_v0 }
  0x60   : > { %880 = vmatpush3.msra.mxu0 %v541_v56 }
  0x61   : > { %881 = vmatprep.subr.mxu0 %v1057_v0 }
  0x62   : > { %882 = vmatpush3.msra.mxu0 %v540_v57 }
  0x63   : > { %883 = vmatprep.subr.mxu0 %v1057_v0 }
  0x64   : > { %884 = vmatpush3.msra.mxu0 %v539_v58 }
  0x65   : > { %885 = vmatprep.subr.mxu0 %v1057_v0 }
  0x66   : > { %886 = vmatpush3.msra.mxu0 %v538_v59 }
  0x67   : > { %887 = vmatprep.subr.mxu0 %v1057_v0 }
  0x68   : > { %888 = vmatpush3.msra.mxu0 %v537_v60 }
  0x69   : > { %889 = vmatprep.subr.mxu0 %v1057_v0 }
  0x6a   : > { %890 = vmatpush3.msra.mxu0 %v536_v61 }
  0x6b   : > { %891 = vmatprep.subr.mxu0 %v1057_v0 }
  0x6c   : > { %892 = vmatpush3.msra.mxu0 %v535_v62 }
  0x6d   : > { %893 = vmatprep.subr.mxu0 %v1057_v0 }
  0x6e   : > { %894 = vmatpush3.msra.mxu0 %v534_v63 }
  0x6f   : > { %895 = vmatprep.subr.mxu0 %v1057_v0 }
  0x70   : > { %896 = vmatpush3.msra.mxu0 %v533_v1 }
  0x71   : > { %897 = vmatprep.subr.mxu0 %v1057_v0 }
  0x72   : > { %898 = vmatpush3.msra.mxu0 %v532_v2 }
  0x73   : > { %899 = vmatprep.subr.mxu0 %v1057_v0 }
  0x74   : > { %900 = vmatpush3.msra.mxu0 %v531_v3 }
  0x75   : > { %901 = vmatprep.subr.mxu0 %v1057_v0 }
  0x76   : > { %902 = vmatpush3.msra.mxu0 %v530_v4 }
 0x116   : > { %v380_v18 = vpop.f32.mrf.mxu0 }
 0x117   : > { %v381_v19 = vadd.f32 %v380_v18, %v291_v17 }
 0x118   : > { %v835_v20 = vpop.f32.mrf.mxu0 }
 0x119   : > { %384 = vadd.xlane.f32.xlu0 %v381_v19 }
 0x1a2   : > { %v385_v25 = vpop.xlane.xlu0 %384 }
 0x1a3   : > { %v386_v26 = vmul.f32 0.03125, %v385_v25 }
 0x1a5   : > { %v387_v28 = vsub.f32 %v381_v19, %v386_v26 }
 0x1a7   : > { %v392_v29 = vmul.f32 %v1202_v27, %v387_v28 }
 0x1a9   : > { %v393_v30 = vmul.f32 %v392_v29, %v392_v29 }
 0x1ab   : > { %394 = vadd.xlane.f32.xlu0 %v393_v30 }
 0x234   : > { %v395_v43 = vpop.xlane.xlu0 %394 }
 0x235   : > { %v396_v44 = vmul.f32 0.03125, %v395_v43 }
 0x237   : > { %v397_v45 = vadd.f32 1e-05, %v396_v44 }
 0x239   : > { %950 = vrsqrt.f32 %v397_v45 }
 0x246   : > { %v951_v46 = vpop.eup %950 }
 0x247   : > { %v399_v48 = vmul.f32 %v951_v46, %v392_v29  ;;  %v1059_v29 = vmov -1.0  }
 0x249   : > { %v404_v50 = vmul.f32 %v742_v47, %v399_v48 }
 0x24b   : > { %v1222_v51 = vadd.f32 %v743_v49, %v404_v50  ;;  %v746_v49 = vld [vmem:[%s1267_s5 + $0x2] ss:$0 sm:$0xff] }
 0x24d   : > { %869 = vmatmul.mubr.f32.vlgmr.msra.gmra.mxu1 %v1222_v51 }
 0x30d   : > { %v499_v6 = vpop.f32.mrf.mxu1 }
 0x30e   : > { %v500_v7 = vadd.f32 %v744_v5, %v499_v6 }
 0x30f   : > { %v870_v8 = vpop.f32.mrf.mxu1 }
 0x310   : > { %v504_v9 = vmul.f32 0.70710677, %v500_v7  ;;  %v503_v32 = vmul.f32 0.5, %v500_v7 }
 0x312   : > { %v507_v10 = vand.u32 2147483647, %v504_v9  ;;  %vm505_vm1 = vcmp.ge.f32.partialorder %v504_v9, 0.0 }
 0x313   : > { %v506_v30 = vsel %vm505_vm1, 1.0, %v1059_v29 }
 0x314   : > { %v508_v11 = vmul.f32 0.3275911, %v507_v10  ;;  %v521_v13 = vsub.f32 0.0, %v507_v10 }
 0x316   : > { %v509_v12 = vadd.f32 1.0, %v508_v11  ;;  %v522_v14 = vmul.f32 %v521_v13, %v507_v10 }
 0x318   : > { %952 = vrcp.f32 %v509_v12  ;;  %v523_v17 = vmul.f32 1.442695, %v522_v14 }
 0x31a   : > { %954 = vpow2.f32 %v523_v17 }
 0x325   : > { %v953_v15 = vpop.eup %952 }
 0x326   : > { %v512_v16 = vmul.f32 1.0614054, %v953_v15 }
 0x327   : > { %v955_v25 = vpop.eup %954 }
 0x328   : > { %v513_v0 = vadd.f32 -1.4531521, %v512_v16 }
 0x32a   : > { %v514_v18 = vmul.f32 %v953_v15, %v513_v0 }
 0x32c   : > { %v515_v19 = vadd.f32 1.4214138, %v514_v18 }
 0x32e   : > { %v516_v20 = vmul.f32 %v953_v15, %v515_v19 }
 0x330   : > { %v517_v21 = vadd.f32 -0.28449672, %v516_v20 }
 0x332   : > { %v518_v22 = vmul.f32 %v953_v15, %v517_v21 }
 0x334   : > { %v519_v23 = vadd.f32 0.2548296, %v518_v22 }
 0x336   : > { %v520_v24 = vmul.f32 %v953_v15, %v519_v23 }
 0x338   : > { %v525_v26 = vmul.f32 %v955_v25, %v520_v24 }
 0x33a   : > { %v526_v28 = vsub.f32 1.0, %v525_v26 }
 0x33c   : > { %v527_v31 = vmul.f32 %v526_v28, %v506_v30 }
 0x33e   : > { %v528_v33 = vadd.f32 1.0, %v527_v31 }
 0x340   : > { %v529_v34 = vmul.f32 %v528_v33, %v503_v32 }
 0x342   : > { %904 = vmatmul.mubr.f32.vlgmr.msra.gmra.mxu0 %v529_v34 }
 0x402   : > { %v616_v36 = vpop.f32.mrf.mxu0 }
 0x403   : > { %v617_v37 = vadd.f32 %v745_v35, %v616_v36 }
 0x404   : > { %v905_v38 = vpop.f32.mrf.mxu0 }
 0x405   : > { %v620_v39 = vadd.f32 %v617_v37, %v1222_v51  ;;  %v747_v51 = vld [vmem:[%s1267_s5 + $0x3] ss:$0 sm:$0xff] }
 0x407   : > { %621 = vadd.xlane.f32.xlu1 %v620_v39 }
 0x490   : > { %v622_v40 = vpop.xlane.xlu1 %621 }
 0x491   : > { %v623_v41 = vmul.f32 0.03125, %v622_v40 }
 0x493   : > { %v624_v42 = vsub.f32 %v620_v39, %v623_v41 }
 0x495   : > { %v625_v43 = vmul.f32 %v1202_v27, %v624_v42 }
 0x497   : > { %v626_v44 = vmul.f32 %v625_v43, %v625_v43 }
 0x499   : > { %627 = vadd.xlane.f32.xlu1 %v626_v44 }
 0x522   : > { %v628_v45 = vpop.xlane.xlu1 %627 }
 0x523   : > { %v629_v46 = vmul.f32 0.03125, %v628_v45 }
 0x525   : > { %v630_v47 = vadd.f32 1e-05, %v629_v46 }
 0x527   : > { %956 = vrsqrt.f32 %v630_v47 }
 0x534   : > { %v957_v48 = vpop.eup %956 }
 0x535   : > { %v632_v50 = vmul.f32 %v957_v48, %v625_v43 }
 0x537   : > { %v637_v52 = vmul.f32 %v746_v49, %v632_v50 }
 0x539   : > { %v642_v27 = vadd.f32 %v747_v51, %v637_v52 }
 0x53b   : > { %643 = vst [vmem:[%s290_s16] sm:$0xff] %v642_v27 }
 0x53c PF: > { %s18_s21 = sadd.s32 1, %s1050_s21  }
 0x53d   : > { %p15_p3 = scmp.ge.s32.totalorder %s18_s21, 4  }
 0x53f   :  { %17 = sbr.rel (!%p15_p3) target bundleno = 2 (0x2), region = 87 }
 0x544   :  { %663 = vsyncpa [#allocation3], 1 }
 0x545   :  { %665 = vsyncpa [#allocation3 + $0x1], 1 }
 0x546   :  { %666 = vsyncpa [#allocation5], 1 }

</bundles_post_ra>
